<compile_context>
chip_gen: v7x
topology: tpu7x:2x2x1
jax: 0.10.0
libtpu: 0.0.40
codegen_flags: <defaults>
</compile_context>

<pallas_src>
import functools

import jax
import jax.numpy as jnp
from jax.experimental import pallas as pl
from jax.experimental.pallas import tpu as pltpu


def _round_up(x, m):
    return ((x + m - 1) // m) * m


def _vmem_capacity_bytes():
    try:
        return int(pltpu.get_tpu_info().vmem_capacity_bytes)
    except Exception:
        return 64 << 20  # conservative fallback = v7x per-TensorCore VMEM


# ------------------- fused embedding gather + mean pool ---------------------

def _gather_pool_kernel(inv_s,
                        xw_ref, xb_ref, xt_ref,          # scalar prefetch (SMEM ids)
                        ew_ref, eb_ref, et_ref,          # gathered (1,1,E) rows
                        ow_ref, ob_ref, ot_ref):         # pooled (1,1,E) outputs
    del xw_ref, xb_ref, xt_ref  # only used by the index_maps
    s = pl.program_id(1)

    @pl.when(s == 0)
    def _init():
        ow_ref[...] = jnp.zeros_like(ow_ref)
        ob_ref[...] = jnp.zeros_like(ob_ref)
        ot_ref[...] = jnp.zeros_like(ot_ref)

    ow_ref[...] += ew_ref[...].astype(jnp.float32)
    ob_ref[...] += eb_ref[...].astype(jnp.float32)
    ot_ref[...] += et_ref[...].astype(jnp.float32)

    @pl.when(s == pl.num_programs(1) - 1)
    def _finalize():
        ow_ref[...] *= inv_s
        ob_ref[...] *= inv_s
        ot_ref[...] *= inv_s


def fused_gather_mean_pool(ids_word, ids_bigram, ids_trigram,
                           emb_word, emb_bigram, emb_trigram, *, batch_pad):
    """Gather embedding rows for three id tensors and mean-pool over seq.

    ids_* : (B, S) int32.  emb_* : (V, 1, E) tables (stored 3-D so the gathered
    (1, 1, E) blocks satisfy the TPU block-shape rules).  Returns three
    (Bp, E) float32 pooled tensors with Bp = batch_pad (rows >= B are padding).
    """
    B, S = ids_word.shape
    E = emb_word.shape[-1]
    Bp = batch_pad
    assert Bp >= B and Bp % 8 == 0

    def pad_ids(ids):
        ids = ids.astype(jnp.int32)
        if Bp != B:
            ids = jnp.concatenate(
                [ids, jnp.zeros((Bp - B, S), jnp.int32)], axis=0)
        return ids.reshape(-1)  # 1-D ids avoid 2-D SMEM padding blow-up

    xw = pad_ids(ids_word)
    xb = pad_ids(ids_bigram)
    xt = pad_ids(ids_trigram)

    # Data-dependent row gather: block index along the vocab axis comes from
    # the scalar-prefetched id arrays (block size 1 => block index == row).
    in_specs = [
        pl.BlockSpec((1, 1, E), lambda b, s, iw, ib, it: (iw[b * S + s], 0, 0)),
        pl.BlockSpec((1, 1, E), lambda b, s, iw, ib, it: (ib[b * S + s], 0, 0)),
        pl.BlockSpec((1, 1, E), lambda b, s, iw, ib, it: (it[b * S + s], 0, 0)),
    ]
    out_specs = [
        pl.BlockSpec((1, 1, E), lambda b, s, *_: (b, 0, 0)),
        pl.BlockSpec((1, 1, E), lambda b, s, *_: (b, 0, 0)),
        pl.BlockSpec((1, 1, E), lambda b, s, *_: (b, 0, 0)),
    ]
    out_shape = tuple(jax.ShapeDtypeStruct((Bp, 1, E), jnp.float32)
                      for _ in range(3))

    emb_item = jnp.dtype(emb_word.dtype).itemsize
    cost = pl.CostEstimate(
        flops=3 * Bp * S * E,
        transcendentals=0,
        bytes_accessed=3 * (Bp * S * E * emb_item + Bp * E * 4 + Bp * S * 4),
    )

    pw, pb, pt = pl.pallas_call(
        functools.partial(_gather_pool_kernel, float(1.0 / S)),
        out_shape=out_shape,
        grid_spec=pltpu.PrefetchScalarGridSpec(
            num_scalar_prefetch=3,
            grid=(Bp, S),
            in_specs=in_specs,
            out_specs=out_specs,
        ),
        compiler_params=pltpu.CompilerParams(
            dimension_semantics=("parallel", "arbitrary")),
        cost_estimate=cost,
    )(xw, xb, xt, emb_word, emb_bigram, emb_trigram)

    # (Bp,1,E) -> (Bp,E): layout-preserving squeeze of the middle unit dim.
    return pw.reshape(Bp, E), pb.reshape(Bp, E), pt.reshape(Bp, E)


# ----------------------- fc1 -> ReLU -> fc2 head kernel ---------------------

def _fasttext_head_kernel(pw_ref, pb_ref, pt_ref,
                          w1w_ref, w1b_ref, w1t_ref, b1_ref,
                          w2_ref, b2_ref, out_ref):
    cdt = w1w_ref.dtype
    # concat(pw,pb,pt) @ w1  ==  pw@w1[:E] + pb@w1[E:2E] + pt@w1[2E:]  (f32 acc)
    h = jnp.dot(pw_ref[...].astype(cdt), w1w_ref[...],
                preferred_element_type=jnp.float32)
    h += jnp.dot(pb_ref[...].astype(cdt), w1b_ref[...],
                 preferred_element_type=jnp.float32)
    h += jnp.dot(pt_ref[...].astype(cdt), w1t_ref[...],
                 preferred_element_type=jnp.float32)
    h = jnp.maximum(h + b1_ref[...], 0.0)          # f32 bias + ReLU
    out = jnp.dot(h.astype(w2_ref.dtype), w2_ref[...],
                  preferred_element_type=jnp.float32)
    out_ref[...] = out + b2_ref[...]


def fasttext_head(pw, pb, pt, w1w, w1b, w1t, b1, w2, b2, *, tb):
    Bp, E = pw.shape
    Hp = w1w.shape[1]
    Cp = w2.shape[1]
    assert Bp % tb == 0
    grid = (Bp // tb,)

    # Grid-constant weights/biases: single VMEM buffer (no double buffering).
    wmode = dict(pipeline_mode=pl.Buffered(1)) if hasattr(pl, "Buffered") else {}

    in_specs = [
        pl.BlockSpec((tb, E), lambda i: (i, 0)),       # pooled word   (tiled)
        pl.BlockSpec((tb, E), lambda i: (i, 0)),       # pooled bigram (tiled)
        pl.BlockSpec((tb, E), lambda i: (i, 0)),       # pooled trigram(tiled)
        pl.BlockSpec((E, Hp), lambda i: (0, 0), **wmode),
        pl.BlockSpec((E, Hp), lambda i: (0, 0), **wmode),
        pl.BlockSpec((E, Hp), lambda i: (0, 0), **wmode),
        pl.BlockSpec((1, Hp), lambda i: (0, 0), **wmode),
        pl.BlockSpec((Hp, Cp), lambda i: (0, 0), **wmode),
        pl.BlockSpec((1, Cp), lambda i: (0, 0), **wmode),
    ]
    out_specs = pl.BlockSpec((tb, Cp), lambda i: (i, 0))

    witem = jnp.dtype(w1w.dtype).itemsize
    weight_bytes = (3 * E * Hp + Hp * Cp) * witem + (Hp + Cp) * 4
    act_bytes = 2 * (3 * tb * E * 4 + tb * Cp * 4)     # double-buffered tiles
    vmem_needed = int(1.5 * (weight_bytes + act_bytes)) + (16 << 20)
    vmem_cap = (_vmem_capacity_bytes() * 5) // 8       # ~40MiB v7x, ~80MiB v5e/v6e
    vmem_limit = int(min(max(vmem_needed, 16 << 20), vmem_cap))

    cost = pl.CostEstimate(
        flops=2 * Bp * (3 * E * Hp + Hp * Cp),
        transcendentals=0,
        bytes_accessed=3 * Bp * E * 4 + weight_bytes + Bp * Cp * 4,
    )

    return pl.pallas_call(
        _fasttext_head_kernel,
        out_shape=jax.ShapeDtypeStruct((Bp, Cp), jnp.float32),
        grid=grid,
        in_specs=in_specs,
        out_specs=out_specs,
        compiler_params=pltpu.CompilerParams(
            dimension_semantics=("parallel",),
            vmem_limit_bytes=vmem_limit,
        ),
        cost_estimate=cost,
    )(pw, pb, pt, w1w, w1b, w1t, b1, w2, b2)


# ------------------------------ model glue ----------------------------------

def _pick_batch_tile(B, batch_tile):
    B8 = _round_up(B, 8)
    if B8 <= batch_tile:
        # Whole batch fits in one tile: split in two (when possible) so the
        # grid has >= 2 steps and both v7x TensorCores are used.
        tb = max(8, ((B8 // 2) // 8) * 8) if B8 >= 16 else B8
    else:
        tb = max(8, (batch_tile // 8) * 8)
    return tb, _round_up(B8, tb)


def init_params(key, n_vocab, n_gram_vocab, embed, hidden_size, num_classes):
    ks = jax.random.split(key, 7)
    emb_word = jax.random.normal(ks[0], (n_vocab, embed), jnp.float32) * 0.1
    emb_word = emb_word.at[n_vocab - 1].set(0.0)   # padding_idx = n_vocab - 1
    emb_bigram = jax.random.normal(ks[1], (n_gram_vocab, embed), jnp.float32) * 0.1
    emb_trigram = jax.random.normal(ks[2], (n_gram_vocab, embed), jnp.float32) * 0.1
    w1 = jax.random.normal(ks[3], (embed * 3, hidden_size), jnp.float32) * 0.05
    b1 = jax.random.normal(ks[4], (hidden_size,), jnp.float32) * 0.05
    w2 = jax.random.normal(ks[5], (hidden_size, num_classes), jnp.float32) * 0.05
    b2 = jax.random.normal(ks[6], (num_classes,), jnp.float32) * 0.05
    return dict(emb_word=emb_word, emb_bigram=emb_bigram, emb_trigram=emb_trigram,
                w1=w1, b1=b1, w2=w2, b2=b2)


def prepare_kernel_params(params, compute_dtype=jnp.float32):
    """One-time padding / splitting / casting into the kernel layout."""
    E = params["emb_word"].shape[1]
    H = params["w1"].shape[1]
    C = params["w2"].shape[1]
    h_align = 256 if H >= 256 else 128      # 256-wide MXU on v6e/v7x; 128 on v5e
    Hp = _round_up(H, h_align)
    Cp = _round_up(C, 128)                  # lane-dense logits

    def pad2(w, r, c):
        return jnp.zeros((r, c), compute_dtype).at[:w.shape[0], :w.shape[1]].set(
            w.astype(compute_dtype))

    w1 = params["w1"]
    return dict(
        emb_word=params["emb_word"].astype(compute_dtype)[:, None, :],      # (V,1,E)
        emb_bigram=params["emb_bigram"].astype(compute_dtype)[:, None, :],
        emb_trigram=params["emb_trigram"].astype(compute_dtype)[:, None, :],
        w1w=pad2(w1[0:E], E, Hp),
        w1b=pad2(w1[E:2 * E], E, Hp),
        w1t=pad2(w1[2 * E:3 * E], E, Hp),
        b1=jnp.zeros((1, Hp), jnp.float32).at[0, :H].set(
            params["b1"].astype(jnp.float32)),
        w2=pad2(params["w2"], Hp, Cp),
        b2=jnp.zeros((1, Cp), jnp.float32).at[0, :C].set(
            params["b2"].astype(jnp.float32)),
    )


def model_forward(kparams, x_word, x_bigram, x_trigram, *, num_classes,
                  batch_tile=512):
    B = x_word.shape[0]
    tb, bp = _pick_batch_tile(B, batch_tile)
    pw, pb, pt = fused_gather_mean_pool(
        x_word, x_bigram, x_trigram,
        kparams["emb_word"], kparams["emb_bigram"], kparams["emb_trigram"],
        batch_pad=bp)
    # TODO(synk): dropout is identity in eval/inference mode; not implemented.
    logits_p = fasttext_head(pw, pb, pt,
                             kparams["w1w"], kparams["w1b"], kparams["w1t"],
                             kparams["b1"], kparams["w2"], kparams["b2"], tb=tb)
    return logits_p[:B, :num_classes]


def reference_forward(params, x_word, x_bigram, x_trigram):
    hi = jax.lax.Precision.HIGHEST
    out_word = jnp.take(params["emb_word"], x_word, axis=0)
    out_bigram = jnp.take(params["emb_bigram"], x_bigram, axis=0)
    out_trigram = jnp.take(params["emb_trigram"], x_trigram, axis=0)
    out = jnp.concatenate([out_word, out_bigram, out_trigram], axis=-1)
    out = out.mean(axis=1)
    out = jnp.dot(out, params["w1"], precision=hi) + params["b1"]
    out = jnp.maximum(out, 0.0)
    out = jnp.dot(out, params["w2"], precision=hi) + params["b2"]
    return out


# ---------------------------------- main -------------------------------------

if __name__ == "__main__":
    n_vocab = 32
    n_gram_vocab = 64
    embed = 32
    hidden_size = 64
    num_classes = 8
    batch = 8
    seq_len = 8

    key = jax.random.PRNGKey(0)
    k_params, k_w, k_b, k_t = jax.random.split(key, 4)

    params = init_params(k_params, n_vocab, n_gram_vocab, embed,
                         hidden_size, num_classes)

    x_word = jax.random.randint(k_w, (batch, seq_len), 0, n_vocab, jnp.int32)
    x_bigram = jax.random.randint(k_b, (batch, seq_len), 0, n_gram_vocab, jnp.int32)
    x_trigram = jax.random.randint(k_t, (batch, seq_len), 0, n_gram_vocab, jnp.int32)

    ref = jax.block_until_ready(
        reference_forward(params, x_word, x_bigram, x_trigram))

    fwd = jax.jit(functools.partial(model_forward, num_classes=num_classes))

    # f32 operand path (matches the PyTorch/JAX reference).
    kparams_f32 = prepare_kernel_params(params, jnp.float32)
    logits = jax.block_until_ready(fwd(kparams_f32, x_word, x_bigram, x_trigram))
    assert logits.shape == (batch, num_classes)
    assert jnp.allclose(logits, ref, atol=1e-3, rtol=1e-3), (
        float(jnp.max(jnp.abs(logits - ref))))

    # bf16 operand path (f32 accumulation + f32 biases) — halves DMA bytes.
    kparams_bf16 = prepare_kernel_params(params, jnp.bfloat16)
    logits_bf16 = jax.block_until_ready(
        fwd(kparams_bf16, x_word, x_bigram, x_trigram))
    assert logits_bf16.shape == (batch, num_classes)
    assert jnp.allclose(logits_bf16, ref, atol=2e-2, rtol=2e-2)

    print("KERNEL_OK")
</pallas_src>

<mosaic_0001>
module attributes {stable_mosaic.version = 11 : i64} {
  func.func @_gather_pool_kernel(%arg0: i32, %arg1: i32, %arg2: memref<64xi32, #tpu.memory_space<smem>>, %arg3: memref<64xi32, #tpu.memory_space<smem>>, %arg4: memref<64xi32, #tpu.memory_space<smem>>, %arg5: memref<1x1x32xf32, #tpu.memory_space<vmem>>, %arg6: memref<1x1x32xf32, #tpu.memory_space<vmem>>, %arg7: memref<1x1x32xf32, #tpu.memory_space<vmem>>, %arg8: memref<1x1x32xf32, #tpu.memory_space<vmem>>, %arg9: memref<1x1x32xf32, #tpu.memory_space<vmem>>, %arg10: memref<1x1x32xf32, #tpu.memory_space<vmem>>) attributes {dimension_semantics = [#tpu.dimension_semantics<parallel>, #tpu.dimension_semantics<arbitrary>], iteration_bounds = array<i64: 8, 8>, scalar_prefetch = 3 : i64, scratch_operands = 0 : i64, tpu.core_type = #tpu.core_type<tc>, window_params = [{transform_indices = @transform_0, window_bounds = array<i64: 1, 1, 32>}, {transform_indices = @transform_1, window_bounds = array<i64: 1, 1, 32>}, {transform_indices = @transform_2, window_bounds = array<i64: 1, 1, 32>}, {transform_indices = @transform_3, window_bounds = array<i64: 1, 1, 32>}, {transform_indices = @transform_4, window_bounds = array<i64: 1, 1, 32>}, {transform_indices = @transform_5, window_bounds = array<i64: 1, 1, 32>}]} {
    %c0_i32 = arith.constant 0 : i32
    %0 = arith.cmpi eq, %arg1, %c0_i32 : i32
    %1 = arith.extui %0 : i1 to i32
    %c0_i32_0 = arith.constant 0 : i32
    %2 = arith.cmpi ne, %1, %c0_i32_0 : i32
    scf.if %2 {
      %cst = arith.constant 0.000000e+00 : f32
      %18 = vector.broadcast %cst : f32 to vector<1x1x32xf32>
      %c0_28 = arith.constant 0 : index
      %c0_29 = arith.constant 0 : index
      %c0_30 = arith.constant 0 : index
      %19 = vector.load %arg8[%c0_28, %c0_29, %c0_30] : memref<1x1x32xf32, #tpu.memory_space<vmem>>, vector<1x1x32xf32>
      tpu.vector_store %arg8[%c0_28, %c0_29, %c0_30], %18 {strides = array<i32>} : memref<1x1x32xf32, #tpu.memory_space<vmem>>, vector<1x1x32xf32>,
      %cst_31 = arith.constant 0.000000e+00 : f32
      %20 = vector.broadcast %cst_31 : f32 to vector<1x1x32xf32>
      %c0_32 = arith.constant 0 : index
      %c0_33 = arith.constant 0 : index
      %c0_34 = arith.constant 0 : index
      %21 = vector.load %arg9[%c0_32, %c0_33, %c0_34] : memref<1x1x32xf32, #tpu.memory_space<vmem>>, vector<1x1x32xf32>
      tpu.vector_store %arg9[%c0_32, %c0_33, %c0_34], %20 {strides = array<i32>} : memref<1x1x32xf32, #tpu.memory_space<vmem>>, vector<1x1x32xf32>,
      %cst_35 = arith.constant 0.000000e+00 : f32
      %22 = vector.broadcast %cst_35 : f32 to vector<1x1x32xf32>
      %c0_36 = arith.constant 0 : index
      %c0_37 = arith.constant 0 : index
      %c0_38 = arith.constant 0 : index
      %23 = vector.load %arg10[%c0_36, %c0_37, %c0_38] : memref<1x1x32xf32, #tpu.memory_space<vmem>>, vector<1x1x32xf32>
      tpu.vector_store %arg10[%c0_36, %c0_37, %c0_38], %22 {strides = array<i32>} : memref<1x1x32xf32, #tpu.memory_space<vmem>>, vector<1x1x32xf32>,
    } else {
    }
    %c0 = arith.constant 0 : index
    %c0_1 = arith.constant 0 : index
    %c0_2 = arith.constant 0 : index
    %3 = vector.load %arg8[%c0, %c0_1, %c0_2] : memref<1x1x32xf32, #tpu.memory_space<vmem>>, vector<1x1x32xf32>
    %c0_3 = arith.constant 0 : index
    %c0_4 = arith.constant 0 : index
    %c0_5 = arith.constant 0 : index
    %4 = vector.load %arg5[%c0_3, %c0_4, %c0_5] : memref<1x1x32xf32, #tpu.memory_space<vmem>>, vector<1x1x32xf32>
    %5 = arith.addf %3, %4 : vector<1x1x32xf32>
    %c0_6 = arith.constant 0 : index
    %c0_7 = arith.constant 0 : index
    %c0_8 = arith.constant 0 : index
    %6 = vector.load %arg8[%c0_6, %c0_7, %c0_8] : memref<1x1x32xf32, #tpu.memory_space<vmem>>, vector<1x1x32xf32>
    tpu.vector_store %arg8[%c0_6, %c0_7, %c0_8], %5 {strides = array<i32>} : memref<1x1x32xf32, #tpu.memory_space<vmem>>, vector<1x1x32xf32>,
    %c0_9 = arith.constant 0 : index
    %c0_10 = arith.constant 0 : index
    %c0_11 = arith.constant 0 : index
    %7 = vector.load %arg9[%c0_9, %c0_10, %c0_11] : memref<1x1x32xf32, #tpu.memory_space<vmem>>, vector<1x1x32xf32>
    %c0_12 = arith.constant 0 : index
    %c0_13 = arith.constant 0 : index
    %c0_14 = arith.constant 0 : index
    %8 = vector.load %arg6[%c0_12, %c0_13, %c0_14] : memref<1x1x32xf32, #tpu.memory_space<vmem>>, vector<1x1x32xf32>
    %9 = arith.addf %7, %8 : vector<1x1x32xf32>
    %c0_15 = arith.constant 0 : index
    %c0_16 = arith.constant 0 : index
    %c0_17 = arith.constant 0 : index
    %10 = vector.load %arg9[%c0_15, %c0_16, %c0_17] : memref<1x1x32xf32, #tpu.memory_space<vmem>>, vector<1x1x32xf32>
    tpu.vector_store %arg9[%c0_15, %c0_16, %c0_17], %9 {strides = array<i32>} : memref<1x1x32xf32, #tpu.memory_space<vmem>>, vector<1x1x32xf32>,
    %c0_18 = arith.constant 0 : index
    %c0_19 = arith.constant 0 : index
    %c0_20 = arith.constant 0 : index
    %11 = vector.load %arg10[%c0_18, %c0_19, %c0_20] : memref<1x1x32xf32, #tpu.memory_space<vmem>>, vector<1x1x32xf32>
    %c0_21 = arith.constant 0 : index
    %c0_22 = arith.constant 0 : index
    %c0_23 = arith.constant 0 : index
    %12 = vector.load %arg7[%c0_21, %c0_22, %c0_23] : memref<1x1x32xf32, #tpu.memory_space<vmem>>, vector<1x1x32xf32>
    %13 = arith.addf %11, %12 : vector<1x1x32xf32>
    %c0_24 = arith.constant 0 : index
    %c0_25 = arith.constant 0 : index
    %c0_26 = arith.constant 0 : index
    %14 = vector.load %arg10[%c0_24, %c0_25, %c0_26] : memref<1x1x32xf32, #tpu.memory_space<vmem>>, vector<1x1x32xf32>
    tpu.vector_store %arg10[%c0_24, %c0_25, %c0_26], %13 {strides = array<i32>} : memref<1x1x32xf32, #tpu.memory_space<vmem>>, vector<1x1x32xf32>,
    %c7_i32 = arith.constant 7 : i32
    %15 = arith.cmpi eq, %arg1, %c7_i32 : i32
    %16 = arith.extui %15 : i1 to i32
    %c0_i32_27 = arith.constant 0 : i32
    %17 = arith.cmpi ne, %16, %c0_i32_27 : i32
    scf.if %17 {
      %c0_28 = arith.constant 0 : index
      %c0_29 = arith.constant 0 : index
      %c0_30 = arith.constant 0 : index
      %18 = vector.load %arg8[%c0_28, %c0_29, %c0_30] : memref<1x1x32xf32, #tpu.memory_space<vmem>>, vector<1x1x32xf32>
      %cst = arith.constant 1.250000e-01 : f32
      %19 = vector.broadcast %cst : f32 to vector<1x1x32xf32>
      %20 = arith.mulf %18, %19 : vector<1x1x32xf32>
      %c0_31 = arith.constant 0 : index
      %c0_32 = arith.constant 0 : index
      %c0_33 = arith.constant 0 : index
      %21 = vector.load %arg8[%c0_31, %c0_32, %c0_33] : memref<1x1x32xf32, #tpu.memory_space<vmem>>, vector<1x1x32xf32>
      tpu.vector_store %arg8[%c0_31, %c0_32, %c0_33], %20 {strides = array<i32>} : memref<1x1x32xf32, #tpu.memory_space<vmem>>, vector<1x1x32xf32>,
      %c0_34 = arith.constant 0 : index
      %c0_35 = arith.constant 0 : index
      %c0_36 = arith.constant 0 : index
      %22 = vector.load %arg9[%c0_34, %c0_35, %c0_36] : memref<1x1x32xf32, #tpu.memory_space<vmem>>, vector<1x1x32xf32>
      %cst_37 = arith.constant 1.250000e-01 : f32
      %23 = vector.broadcast %cst_37 : f32 to vector<1x1x32xf32>
      %24 = arith.mulf %22, %23 : vector<1x1x32xf32>
      %c0_38 = arith.constant 0 : index
      %c0_39 = arith.constant 0 : index
      %c0_40 = arith.constant 0 : index
      %25 = vector.load %arg9[%c0_38, %c0_39, %c0_40] : memref<1x1x32xf32, #tpu.memory_space<vmem>>, vector<1x1x32xf32>
      tpu.vector_store %arg9[%c0_38, %c0_39, %c0_40], %24 {strides = array<i32>} : memref<1x1x32xf32, #tpu.memory_space<vmem>>, vector<1x1x32xf32>,
      %c0_41 = arith.constant 0 : index
      %c0_42 = arith.constant 0 : index
      %c0_43 = arith.constant 0 : index
      %26 = vector.load %arg10[%c0_41, %c0_42, %c0_43] : memref<1x1x32xf32, #tpu.memory_space<vmem>>, vector<1x1x32xf32>
      %cst_44 = arith.constant 1.250000e-01 : f32
      %27 = vector.broadcast %cst_44 : f32 to vector<1x1x32xf32>
      %28 = arith.mulf %26, %27 : vector<1x1x32xf32>
      %c0_45 = arith.constant 0 : index
      %c0_46 = arith.constant 0 : index
      %c0_47 = arith.constant 0 : index
      %29 = vector.load %arg10[%c0_45, %c0_46, %c0_47] : memref<1x1x32xf32, #tpu.memory_space<vmem>>, vector<1x1x32xf32>
      tpu.vector_store %arg10[%c0_45, %c0_46, %c0_47], %28 {strides = array<i32>} : memref<1x1x32xf32, #tpu.memory_space<vmem>>, vector<1x1x32xf32>,
    } else {
    }
    return
  }
  func.func @transform_0(%arg0: i32, %arg1: i32, %arg2: memref<64xi32, #tpu.memory_space<smem>>, %arg3: memref<64xi32, #tpu.memory_space<smem>>, %arg4: memref<64xi32, #tpu.memory_space<smem>>) -> (i32, i32, i32) {
    %c8_i32 = arith.constant 8 : i32
    %0 = arith.muli %arg0, %c8_i32 : i32
    %1 = arith.addi %0, %arg1 : i32
    %2 = arith.index_cast %1 : i32 to index
    %3 = memref.load %arg2[%2] : memref<64xi32, #tpu.memory_space<smem>>
    %c0_i32 = arith.constant 0 : i32
    %c0_i32_0 = arith.constant 0 : i32
    %c0_i32_1 = arith.constant 0 : i32
    return %3, %c0_i32, %c0_i32_0 : i32, i32, i32
  }
  func.func @transform_1(%arg0: i32, %arg1: i32, %arg2: memref<64xi32, #tpu.memory_space<smem>>, %arg3: memref<64xi32, #tpu.memory_space<smem>>, %arg4: memref<64xi32, #tpu.memory_space<smem>>) -> (i32, i32, i32) {
    %c8_i32 = arith.constant 8 : i32
    %0 = arith.muli %arg0, %c8_i32 : i32
    %1 = arith.addi %0, %arg1 : i32
    %2 = arith.index_cast %1 : i32 to index
    %3 = memref.load %arg3[%2] : memref<64xi32, #tpu.memory_space<smem>>
    %c0_i32 = arith.constant 0 : i32
    %c0_i32_0 = arith.constant 0 : i32
    %c0_i32_1 = arith.constant 0 : i32
    return %3, %c0_i32, %c0_i32_0 : i32, i32, i32
  }
  func.func @transform_2(%arg0: i32, %arg1: i32, %arg2: memref<64xi32, #tpu.memory_space<smem>>, %arg3: memref<64xi32, #tpu.memory_space<smem>>, %arg4: memref<64xi32, #tpu.memory_space<smem>>) -> (i32, i32, i32) {
    %c8_i32 = arith.constant 8 : i32
    %0 = arith.muli %arg0, %c8_i32 : i32
    %1 = arith.addi %0, %arg1 : i32
    %2 = arith.index_cast %1 : i32 to index
    %3 = memref.load %arg4[%2] : memref<64xi32, #tpu.memory_space<smem>>
    %c0_i32 = arith.constant 0 : i32
    %c0_i32_0 = arith.constant 0 : i32
    %c0_i32_1 = arith.constant 0 : i32
    return %3, %c0_i32, %c0_i32_0 : i32, i32, i32
  }
  func.func @transform_3(%arg0: i32, %arg1: i32, %arg2: memref<64xi32, #tpu.memory_space<smem>>, %arg3: memref<64xi32, #tpu.memory_space<smem>>, %arg4: memref<64xi32, #tpu.memory_space<smem>>) -> (i32, i32, i32) {
    %c0_i32 = arith.constant 0 : i32
    %c0_i32_0 = arith.constant 0 : i32
    %c0_i32_1 = arith.constant 0 : i32
    return %arg0, %c0_i32, %c0_i32_0 : i32, i32, i32
  }
  func.func @transform_4(%arg0: i32, %arg1: i32, %arg2: memref<64xi32, #tpu.memory_space<smem>>, %arg3: memref<64xi32, #tpu.memory_space<smem>>, %arg4: memref<64xi32, #tpu.memory_space<smem>>) -> (i32, i32, i32) {
    %c0_i32 = arith.constant 0 : i32
    %c0_i32_0 = arith.constant 0 : i32
    %c0_i32_1 = arith.constant 0 : i32
    return %arg0, %c0_i32, %c0_i32_0 : i32, i32, i32
  }
  func.func @transform_5(%arg0: i32, %arg1: i32, %arg2: memref<64xi32, #tpu.memory_space<smem>>, %arg3: memref<64xi32, #tpu.memory_space<smem>>, %arg4: memref<64xi32, #tpu.memory_space<smem>>) -> (i32, i32, i32) {
    %c0_i32 = arith.constant 0 : i32
    %c0_i32_0 = arith.constant 0 : i32
    %c0_i32_1 = arith.constant 0 : i32
    return %arg0, %c0_i32, %c0_i32_0 : i32, i32, i32
  }
}

module attributes {stable_mosaic.version = 11 : i64} {
  func.func @_fasttext_head_kernel(%arg0: i32, %arg1: memref<8x32xf32, #tpu.memory_space<vmem>>, %arg2: memref<8x32xf32, #tpu.memory_space<vmem>>, %arg3: memref<8x32xf32, #tpu.memory_space<vmem>>, %arg4: memref<32x128xf32, #tpu.memory_space<vmem>>, %arg5: memref<32x128xf32, #tpu.memory_space<vmem>>, %arg6: memref<32x128xf32, #tpu.memory_space<vmem>>, %arg7: memref<1x128xf32, #tpu.memory_space<vmem>>, %arg8: memref<128x128xf32, #tpu.memory_space<vmem>>, %arg9: memref<1x128xf32, #tpu.memory_space<vmem>>, %arg10: memref<8x128xf32, #tpu.memory_space<vmem>>) attributes {dimension_semantics = [#tpu.dimension_semantics<parallel>], iteration_bounds = array<i64: 1>, scalar_prefetch = 0 : i64, scratch_operands = 0 : i64, tpu.core_type = #tpu.core_type<tc>, window_params = [{transform_indices = @transform_0, window_bounds = array<i64: 8, 32>}, {transform_indices = @transform_1, window_bounds = array<i64: 8, 32>}, {transform_indices = @transform_2, window_bounds = array<i64: 8, 32>}, {pipeline_mode = #tpu.pipeline_mode<synchronous>, transform_indices = @transform_3, window_bounds = array<i64: 32, 128>}, {pipeline_mode = #tpu.pipeline_mode<synchronous>, transform_indices = @transform_4, window_bounds = array<i64: 32, 128>}, {pipeline_mode = #tpu.pipeline_mode<synchronous>, transform_indices = @transform_5, window_bounds = array<i64: 32, 128>}, {pipeline_mode = #tpu.pipeline_mode<synchronous>, transform_indices = @transform_6, window_bounds = array<i64: 1, 128>}, {pipeline_mode = #tpu.pipeline_mode<synchronous>, transform_indices = @transform_7, window_bounds = array<i64: 128, 128>}, {pipeline_mode = #tpu.pipeline_mode<synchronous>, transform_indices = @transform_8, window_bounds = array<i64: 1, 128>}, {transform_indices = @transform_9, window_bounds = array<i64: 8, 128>}]} {
    %c0 = arith.constant 0 : index
    %c0_0 = arith.constant 0 : index
    %0 = vector.load %arg1[%c0, %c0_0] : memref<8x32xf32, #tpu.memory_space<vmem>>, vector<8x32xf32>
    %c0_1 = arith.constant 0 : index
    %c0_2 = arith.constant 0 : index
    %1 = vector.load %arg4[%c0_1, %c0_2] : memref<32x128xf32, #tpu.memory_space<vmem>>, vector<32x128xf32>
    %cst = arith.constant dense<0.000000e+00> : vector<8x128xf32>
    %2 = tpu.matmul %0, %1, %cst {dimension_numbers = #tpu.dot_dimension_numbers<[1], [0], [0], [1], [0, 0, 1, 1], [], []>} : vector<8x32xf32>, vector<32x128xf32>, vector<8x128xf32> -> vector<8x128xf32>
    %c0_3 = arith.constant 0 : index
    %c0_4 = arith.constant 0 : index
    %3 = vector.load %arg2[%c0_3, %c0_4] : memref<8x32xf32, #tpu.memory_space<vmem>>, vector<8x32xf32>
    %c0_5 = arith.constant 0 : index
    %c0_6 = arith.constant 0 : index
    %4 = vector.load %arg5[%c0_5, %c0_6] : memref<32x128xf32, #tpu.memory_space<vmem>>, vector<32x128xf32>
    %cst_7 = arith.constant dense<0.000000e+00> : vector<8x128xf32>
    %5 = tpu.matmul %3, %4, %cst_7 {dimension_numbers = #tpu.dot_dimension_numbers<[1], [0], [0], [1], [0, 0, 1, 1], [], []>} : vector<8x32xf32>, vector<32x128xf32>, vector<8x128xf32> -> vector<8x128xf32>
    %6 = arith.addf %2, %5 : vector<8x128xf32>
    %c0_8 = arith.constant 0 : index
    %c0_9 = arith.constant 0 : index
    %7 = vector.load %arg3[%c0_8, %c0_9] : memref<8x32xf32, #tpu.memory_space<vmem>>, vector<8x32xf32>
    %c0_10 = arith.constant 0 : index
    %c0_11 = arith.constant 0 : index
    %8 = vector.load %arg6[%c0_10, %c0_11] : memref<32x128xf32, #tpu.memory_space<vmem>>, vector<32x128xf32>
    %cst_12 = arith.constant dense<0.000000e+00> : vector<8x128xf32>
    %9 = tpu.matmul %7, %8, %cst_12 {dimension_numbers = #tpu.dot_dimension_numbers<[1], [0], [0], [1], [0, 0, 1, 1], [], []>} : vector<8x32xf32>, vector<32x128xf32>, vector<8x128xf32> -> vector<8x128xf32>
    %10 = arith.addf %6, %9 : vector<8x128xf32>
    %c0_13 = arith.constant 0 : index
    %c0_14 = arith.constant 0 : index
    %11 = vector.load %arg7[%c0_13, %c0_14] : memref<1x128xf32, #tpu.memory_space<vmem>>, vector<1x128xf32>
    %12 = vector.broadcast %11 : vector<1x128xf32> to vector<8x128xf32>
    %13 = arith.addf %10, %12 : vector<8x128xf32>
    %cst_15 = arith.constant 0.000000e+00 : f32
    %14 = vector.broadcast %cst_15 : f32 to vector<8x128xf32>
    %15 = arith.maximumf %13, %14 : vector<8x128xf32>
    %c0_16 = arith.constant 0 : index
    %c0_17 = arith.constant 0 : index
    %16 = vector.load %arg8[%c0_16, %c0_17] : memref<128x128xf32, #tpu.memory_space<vmem>>, vector<128x128xf32>
    %cst_18 = arith.constant dense<0.000000e+00> : vector<8x128xf32>
    %17 = tpu.matmul %15, %16, %cst_18 {dimension_numbers = #tpu.dot_dimension_numbers<[1], [0], [0], [1], [0, 0, 1, 1], [], []>} : vector<8x128xf32>, vector<128x128xf32>, vector<8x128xf32> -> vector<8x128xf32>
    %c0_19 = arith.constant 0 : index
    %c0_20 = arith.constant 0 : index
    %18 = vector.load %arg9[%c0_19, %c0_20] : memref<1x128xf32, #tpu.memory_space<vmem>>, vector<1x128xf32>
    %19 = vector.broadcast %18 : vector<1x128xf32> to vector<8x128xf32>
    %20 = arith.addf %17, %19 : vector<8x128xf32>
    %c0_21 = arith.constant 0 : index
    %c0_22 = arith.constant 0 : index
    %21 = vector.load %arg10[%c0_21, %c0_22] : memref<8x128xf32, #tpu.memory_space<vmem>>, vector<8x128xf32>
    tpu.vector_store %arg10[%c0_21, %c0_22], %20 {strides = array<i32>} : memref<8x128xf32, #tpu.memory_space<vmem>>, vector<8x128xf32>,
    return
  }
  func.func @transform_0(%arg0: i32) -> (i32, i32) {
    %c0_i32 = arith.constant 0 : i32
    %c0_i32_0 = arith.constant 0 : i32
    return %arg0, %c0_i32 : i32, i32
  }
  func.func @transform_1(%arg0: i32) -> (i32, i32) {
    %c0_i32 = arith.constant 0 : i32
    %c0_i32_0 = arith.constant 0 : i32
    return %arg0, %c0_i32 : i32, i32
  }
  func.func @transform_2(%arg0: i32) -> (i32, i32) {
    %c0_i32 = arith.constant 0 : i32
    %c0_i32_0 = arith.constant 0 : i32
    return %arg0, %c0_i32 : i32, i32
  }
  func.func @transform_3(%arg0: i32) -> (i32, i32) {
    %c0_i32 = arith.constant 0 : i32
    %c0_i32_0 = arith.constant 0 : i32
    %c0_i32_1 = arith.constant 0 : i32
    return %c0_i32, %c0_i32_0 : i32, i32
  }
  func.func @transform_4(%arg0: i32) -> (i32, i32) {
    %c0_i32 = arith.constant 0 : i32
    %c0_i32_0 = arith.constant 0 : i32
    %c0_i32_1 = arith.constant 0 : i32
    return %c0_i32, %c0_i32_0 : i32, i32
  }
  func.func @transform_5(%arg0: i32) -> (i32, i32) {
    %c0_i32 = arith.constant 0 : i32
    %c0_i32_0 = arith.constant 0 : i32
    %c0_i32_1 = arith.constant 0 : i32
    return %c0_i32, %c0_i32_0 : i32, i32
  }
  func.func @transform_6(%arg0: i32) -> (i32, i32) {
    %c0_i32 = arith.constant 0 : i32
    %c0_i32_0 = arith.constant 0 : i32
    %c0_i32_1 = arith.constant 0 : i32
    return %c0_i32, %c0_i32_0 : i32, i32
  }
  func.func @transform_7(%arg0: i32) -> (i32, i32) {
    %c0_i32 = arith.constant 0 : i32
    %c0_i32_0 = arith.constant 0 : i32
    %c0_i32_1 = arith.constant 0 : i32
    return %c0_i32, %c0_i32_0 : i32, i32
  }
  func.func @transform_8(%arg0: i32) -> (i32, i32) {
    %c0_i32 = arith.constant 0 : i32
    %c0_i32_0 = arith.constant 0 : i32
    %c0_i32_1 = arith.constant 0 : i32
    return %c0_i32, %c0_i32_0 : i32, i32
  }
  func.func @transform_9(%arg0: i32) -> (i32, i32) {
    %c0_i32 = arith.constant 0 : i32
    %c0_i32_0 = arith.constant 0 : i32
    return %arg0, %c0_i32 : i32, i32
  }
}

</mosaic_0001>

<bundles_post_ra>
// kernel: model_forward.2
= control target key start
LH: loop header
LB: loop body
LE: loop exit
PB: predicated region body
PF: predicated region fallthrough
CT: control target
= control target key end

     0   :  { %s802_s0 = inlined_call_operand.vmem [shape: s32[64], index: 0, kind: input, shape index: {}]   ;;  %s803_s3 = inlined_call_operand.vmem [shape: f32[32,1,32], index: 3, kind: input, shape index: {}]   ;;  %s804_s4 = inlined_call_operand.vmem [shape: f32[64,1,32], index: 4, kind: input, shape index: {}]   ;;  %s805_s5 = inlined_call_operand.vmem [shape: f32[64,1,32], index: 5, kind: input, shape index: {}]   ;;  %s806_s6 = inlined_call_operand.vmem [shape: f32[8,1,32], index: 6, kind: output, shape index: {0}]   ;;  %s807_s7 = inlined_call_operand.vmem [shape: f32[8,1,32], index: 7, kind: output, shape index: {1}]   ;;  %s808_s8 = inlined_call_operand.vmem [shape: f32[8,1,32], index: 8, kind: output, shape index: {2}]   ;;  %s809_s1 = inlined_call_operand.vmem [shape: s32[64], index: 1, kind: input, shape index: {}]   ;;  %s810_s2 = inlined_call_operand.vmem [shape: s32[64], index: 2, kind: input, shape index: {}]  }
   0x1   :  { %s14_s29 = sshll.u32 %s802_s0, 4  ;;  %s18_s10 = sshll.u32 %s809_s1, 4  ;;  %s15_s29 = int_to_ptr.vmem [resolvable:$true] %s14_s29  ;;  %s19_s10 = int_to_ptr.vmem [resolvable:$true] %s18_s10 }
   0x2   :  { %s571_s11 = scalar_lea.vmem %s15_s29, 16  ;;  %p576_p1 = scmp.lt.s32.totalorder %s15_s29, %s15_s29 }
   0x3   :  { %p572_p0 = scmp.ne.s32.totalorder %s15_s29, %s571_s11  ;;  %p577_p2 = scmp.lt.s32.totalorder %s571_s11, %s571_s11 }
   0x5   :  { %p578_p3 = por %p577_p2, %p576_p1 }
   0x7   :  { %p579_p4 = pnand %p578_p3, %p572_p0 }
   0x9   :  { %582 = shalt.err (!%p579_p4)  }
   0xa   :  { %s649_s12 = smov [#allocation3]   ;;  %s583_s13 = scalar_lea.vmem %s19_s10, 16 }
   0xb   :  { %17 = dma.vmem_to_smem %s15_s29, 16, %s649_s12, [#allocation2] }
   0xc   :  { %p584_p5 = scmp.ne.s32.totalorder %s19_s10, %s583_s13  ;;  %p588_p6 = scmp.lt.s32.totalorder %s19_s10, %s19_s10 }
   0xd   :  { %p589_p7 = scmp.lt.s32.totalorder %s583_s13, %s583_s13 }
   0xf   :  { %p590_p8 = por %p589_p7, %p588_p6 }
  0x11   :  { %p591_p9 = pnand %p590_p8, %p584_p5 }
  0x13   :  { %594 = shalt.err (!%p591_p9)  }
  0x14   :  { %s650_s0 = smov [#allocation4]   ;;  %s22_s15 = sshll.u32 %s810_s2, 4  ;;  %s23_s15 = int_to_ptr.vmem [resolvable:$true] %s22_s15 }
  0x15   :  { %21 = dma.vmem_to_smem %s19_s10, 16, %s650_s0, [#allocation2] }
  0x16   :  { %s595_s16 = scalar_lea.vmem %s23_s15, 16  ;;  %p600_p11 = scmp.lt.s32.totalorder %s23_s15, %s23_s15 }
  0x17   :  { %p596_p10 = scmp.ne.s32.totalorder %s23_s15, %s595_s16  ;;  %p601_p12 = scmp.lt.s32.totalorder %s595_s16, %s595_s16 }
  0x19   :  { %p602_p13 = por %p601_p12, %p600_p11 }
  0x1b   :  { %p603_p0 = pnand %p602_p13, %p596_p10 }
  0x1d   :  { %606 = shalt.err (!%p603_p0)  }
  0x1e   :  { %s651_s17 = smov [#allocation5]  }
  0x1f   :  { %25 = dma.vmem_to_smem %s23_s15, 16, %s651_s17, [#allocation2] }
  0x20   :  { %627 = dma.done.wait [#allocation2], 48 }
  0x21   :  { %628 = vsyncadd [#allocation2], 4294967248 }
  0x22   :  { %27 = sfence }
  0x23   :  { %s707_s18 = smov 0   ;;  %s709_s19 = smov 0  }
  0x24   :  { %s711_s20 = smov 0   ;;  %s713_s2 = smov 0  }
  0x25   :  { %s715_s21 = smov 0  }
  0x26 LB: > { %s42_s22 = sadd.s32 1, %s639_s20  ;;  %s45_s23 = sadd.s32 1, %s643_s2  ;;  %s647_s21 = sphi %s715_s21, %s33_s21   ;;  %s643_s2 = sphi %s713_s2, %s814_s2   ;;  %s639_s20 = sphi %s711_s20, %s813_s20   ;;  %s635_s19 = sphi %s709_s19, %s812_s19   ;;  %s631_s18 = sphi %s707_s18, %s811_s18  }
  0x27   : > { %p43_p1 = scmp.ge.s32.totalorder %s42_s22, 8  ;;  %p519_p2 = scmp.ge.s32.totalorder %s647_s21, 1 }
  0x28   : > { %p271_p3 = scmp.lt.s32.totalorder %s647_s21, 65 }
  0x29   : > { %s816_s22 = smov (%p43_p1, %s42_s22), 0  ;;  %s818_s23 = smov (!%p43_p1, %s45_s23), %s643_s2 }
  0x2a   : > { %p272_p4 = pnand %p519_p2, %p271_p3  ;;  %p47_p5 = scmp.ge.s32.totalorder %s818_s23, 8 }
  0x2b   : > { %s520_s24 = sshll.u32 (!%p272_p4), %s635_s19, 3  ;;  %p343_p6 = scmp.lt.s32.totalorder (!%p272_p4), %s635_s19, 7 }
  0x2c   : > { %s820_s23 = smov (%p47_p5, %s818_s23), 0  ;;  %275 = sbr.rel (%p272_p4) target bundleno = 81 (0x51), region = 32 }
  0x2d   : > { %s317_s25 = sadd.s32 (!%p272_p4), %s631_s18, %s520_s24  ;;  %p523_p10 = scmp.ne.s32.totalorder (!%p272_p4), %s631_s18, 0 }
  0x2e   : > { %s318_s26 = sld [smem:[#allocation3 + %s317_s25]] (!%p272_p4) }
  0x2f   : > { %s327_s27 = sld [smem:[#allocation4 + %s317_s25]] (!%p272_p4) }
  0x30   : > { %s336_s28 = sld [smem:[#allocation5 + %s317_s25]] (!%p272_p4) }
  0x33   : > { %s822_s19 = smov (!%p343_p6, %s635_s19), 7  ;;  %vm356_vm0 = vcmask (!%p523_p10), 253952   ;;  %v652_v0 = vmov (!%p523_p10), 0.0  }
  0x34   : > { %s743_s9 = scalar_lea.vmem %s806_s6, %s822_s19  ;;  %s748_s12 = scalar_lea.vmem %s807_s7, %s822_s19 }
  0x35   : > { %s753_s1 = scalar_lea.vmem %s808_s8, %s822_s19  ;;  %p319_p7 = scmp.lt.s32.totalorder %s318_s26, 31  ;;  %357 = vst.msk [vmem:[%s743_s9] sm:$0x1] (!%p523_p10), %vm356_vm0, %v652_v0  ;;  %358 = vst.msk [vmem:[%s748_s12] sm:$0x1] (!%p523_p10), %vm356_vm0, %v652_v0 }
  0x36   : > { %p328_p8 = scmp.lt.s32.totalorder %s327_s27, 63  ;;  %p337_p9 = scmp.lt.s32.totalorder %s336_s28, 63  ;;  %359 = vst.msk [vmem:[%s753_s1] sm:$0x1] (!%p523_p10), %vm356_vm0, %v652_v0 }
  0x37   : > { %s824_s26 = smov (!%p319_p7, %s318_s26), 31  ;;  %355 = sbr.rel (%p523_p10) target bundleno = 62 (0x3e), region = 36 }
  0x38   : > { %s826_s27 = smov (!%p328_p8, %s327_s27), 63  ;;  %s321_s16 = scalar_lea.vmem %s803_s3, %s824_s26 }
  0x39   : > { %s330_s25 = scalar_lea.vmem %s804_s4, %s826_s27  ;;  %s828_s28 = smov (!%p337_p9, %s336_s28), 63 }
  0x3a   : > { %s339_s10 = scalar_lea.vmem %s805_s5, %s828_s28 }
  0x3e PF: > { %v360_v1 = vld [vmem:[%s743_s9] sm:$0x1]  ;;  %vm363_vm1 = vcmask 253952   ;;  %p524_p11 = scmp.ne.s32.totalorder %s631_s18, 7 }
  0x3f   : > { %v361_v2 = vld [vmem:[%s321_s16] sm:$0x1] }
  0x40   : > { %v362_v3 = vadd.f32 %v361_v2, %v360_v1  ;;  %v365_v4 = vld [vmem:[%s748_s12] sm:$0x1]  ;;  %376 = sbr.rel (%p524_p11) target bundleno = 81 (0x51), region = 40 }
  0x41   : > { %v366_v5 = vld [vmem:[%s330_s25] sm:$0x1] }
  0x42   : > { %v369_v6 = vld [vmem:[%s753_s1] sm:$0x1]  ;;  %v367_v7 = vadd.f32 %v366_v5, %v365_v4  ;;  %364 = vst.msk [vmem:[%s743_s9] sm:$0x1] %vm363_vm1, %v362_v3 }
  0x43   : > { %v370_v8 = vld [vmem:[%s339_s10] sm:$0x1] }
  0x44   : > { %v371_v9 = vadd.f32 %v370_v8, %v369_v6  ;;  %368 = vst.msk [vmem:[%s748_s12] sm:$0x1] %vm363_vm1, %v367_v7 }
  0x46   : > { %372 = vst.msk [vmem:[%s753_s1] sm:$0x1] %vm363_vm1, %v371_v9 }
  0x49   : > { %v377_v10 = vld [vmem:[%s743_s9] sm:$0x1] }
  0x4a   : > { %v378_v13 = vmul.f32 0.125, %v377_v10 }
  0x4b   : > { %v380_v11 = vld [vmem:[%s748_s12] sm:$0x1] }
  0x4c   : > { %v381_v14 = vmul.f32 0.125, %v380_v11  ;;  %379 = vst.msk [vmem:[%s743_s9] sm:$0x1] %vm363_vm1, %v378_v13 }
  0x4d   : > { %v383_v12 = vld [vmem:[%s753_s1] sm:$0x1] }
  0x4e   : > { %v384_v15 = vmul.f32 0.125, %v383_v12  ;;  %382 = vst.msk [vmem:[%s748_s12] sm:$0x1] %vm363_vm1, %v381_v14 }
  0x50   : > { %385 = vst.msk [vmem:[%s753_s1] sm:$0x1] %vm363_vm1, %v384_v15 }
  0x51 PF: > { %s33_s21 = sadd.s32 1, %s647_s21   ;;  %s811_s18 = smov %s639_s20 }
  0x52   : > { %p30_p12 = scmp.ge.s32.totalorder %s33_s21, 66   ;;  %s812_s19 = smov %s643_s2 }
  0x53   : > { %s813_s20 = smov %s816_s22  ;;  %s814_s2 = smov %s820_s23 }
  0x54   :  { %32 = sbr.rel (!%p30_p12) target bundleno = 38 (0x26), region = 100 }

// kernel: model_forward.3
= control target key start
LH: loop header
LB: loop body
LE: loop exit
PB: predicated region body
PF: predicated region fallthrough
CT: control target
= control target key end

     0   :  { %v561_v3 = vmov 0.0|0.0   ;;  %vm562_vm0 = vmmov 0   ;;  %v563_v6 = vmov 0.0   ;;  %s747_s0 = inlined_call_operand.vmem [shape: f32[8,32], index: 0, kind: input, shape index: {}]   ;;  %s748_s1 = inlined_call_operand.vmem [shape: f32[8,32], index: 1, kind: input, shape index: {}]   ;;  %s749_s2 = inlined_call_operand.vmem [shape: f32[8,32], index: 2, kind: input, shape index: {}]   ;;  %s750_s3 = inlined_call_operand.vmem [shape: f32[32,128], index: 3, kind: input, shape index: {}]   ;;  %s751_s4 = inlined_call_operand.vmem [shape: f32[32,128], index: 4, kind: input, shape index: {}]   ;;  %s752_s5 = inlined_call_operand.vmem [shape: f32[32,128], index: 5, kind: input, shape index: {}]   ;;  %s753_s6 = inlined_call_operand.vmem [shape: f32[1,128], index: 6, kind: input, shape index: {}]   ;;  %s754_s7 = inlined_call_operand.vmem [shape: f32[128,128], index: 7, kind: input, shape index: {}]   ;;  %s755_s8 = inlined_call_operand.vmem [shape: f32[1,128], index: 8, kind: input, shape index: {}]   ;;  %s756_s9 = inlined_call_operand.hbm [shape: f32[8,128], index: 9, kind: output, shape index: {}]  }
   0x1   :  { %v39_v0 = vld [vmem:[%s751_s4] sm:$0xff]  ;;  %v40_v1 = vld [vmem:[%s751_s4 + $0x8] sm:$0xff]  ;;  %v41_v2 = vld [vmem:[%s751_s4 + $0x10] sm:$0xff]  ;;  %491 = vmatprep.subr.bf16.mxu0 %v561_v3  ;;  %431 = vmatprep.mubr.msk.f32.mxu0 %vm562_vm0, %v563_v6 }
   0x2   :  { %v492_v4 = vpack.c.bf16 %v40_v1, %v39_v0  ;;  %v42_v5 = vld [vmem:[%s751_s4 + $0x18] sm:$0xff]  ;;  %509 = vmatprep.subr.bf16.mxu1 %v561_v3  ;;  %488 = vmatprep.mubr.msk.f32.mxu1 %vm562_vm0, %v563_v6  ;;  %v34_v8 = vld [vmem:[%s750_s3] sm:$0xff]  ;;  %v35_v9 = vld [vmem:[%s750_s3 + $0x8] sm:$0xff] }
   0x3   :  { %v495_v7 = vpack.c.bf16 %v42_v5, %v41_v2  ;;  %v278_v10 = vld [vmem:[%s754_s7] sm:$0xff]  ;;  %v279_v11 = vld [vmem:[%s754_s7 + $0x8] sm:$0xff]  ;;  %v280_v12 = vld [vmem:[%s754_s7 + $0x10] sm:$0xff] }
   0x4   :  { %493 = vmatpush3.bf16.msra.mxu0 %v492_v4  ;;  %v510_v13 = vpack.c.bf16 %v279_v11, %v278_v10  ;;  %v281_v14 = vld [vmem:[%s754_s7 + $0x18] sm:$0xff] }
   0x5   :  { %494 = vmatprep.subr.bf16.mxu0 %v561_v3 }
   0x6   :  { %14 = vsyncpa [#allocation3], 0  ;;  %v38_v15 = vld [vmem:[%s748_s1] sm:$0xff]  ;;  %vm43_vm1 = vcmask 261120   ;;  %v498_v16 = vpack.c.bf16 %v35_v9, %v34_v8  ;;  %v36_v17 = vld [vmem:[%s750_s3 + $0x10] sm:$0xff]  ;;  %511 = vmatpush3.bf16.msra.mxu1 %v510_v13  ;;  %v513_v19 = vpack.c.bf16 %v281_v14, %v280_v12 }
   0x7   :  { %v37_v18 = vld [vmem:[%s750_s3 + $0x18] sm:$0xff]  ;;  %512 = vmatprep.subr.bf16.mxu1 %v561_v3  ;;  %v191_v21 = vld [vmem:[%s752_s5] sm:$0xff]  ;;  %v192_v22 = vld [vmem:[%s752_s5 + $0x8] sm:$0xff] }
   0x8   :  { %496 = vmatpush3.bf16.msra.mxu0 %v495_v7  ;;  %v501_v20 = vpack.c.bf16 %v37_v18, %v36_v17  ;;  %v33_v23 = vld [vmem:[%s747_s0] sm:$0xff]  ;;  %v504_v24 = vpack.c.bf16 %v192_v22, %v191_v21  ;;  %v193_v25 = vld [vmem:[%s752_s5 + $0x10] sm:$0xff]  ;;  %v194_v26 = vld [vmem:[%s752_s5 + $0x18] sm:$0xff] }
   0x9   :  { %497 = vmatprep.subr.bf16.mxu0 %v561_v3  ;;  %v507_v27 = vpack.c.bf16 %v194_v26, %v193_v25  ;;  %v190_v28 = vld [vmem:[%s749_s2] sm:$0xff]  ;;  %v283_v30 = vld [vmem:[%s754_s7 + $0x28] sm:$0xff]  ;;  %v284_v32 = vld [vmem:[%s754_s7 + $0x30] sm:$0xff] }
   0xa   :  { %514 = vmatpush3.bf16.msra.mxu1 %v513_v19  ;;  %v282_v29 = vld [vmem:[%s754_s7 + $0x20] sm:$0xff]  ;;  %v285_v33 = vld [vmem:[%s754_s7 + $0x38] sm:$0xff]  ;;  %v287_v36 = vld [vmem:[%s754_s7 + $0x48] sm:$0xff] }
   0xb   :  { %432 = vmatmul.mubr.msk.f32.vlgmr.msra.gmra.mrb[0].mxu0 %vm43_vm1, %v38_v15  ;;  %515 = vmatprep.subr.bf16.mxu1 %v561_v3  ;;  %v516_v31 = vpack.c.bf16 %v283_v30, %v282_v29  ;;  %v519_v34 = vpack.c.bf16 %v285_v33, %v284_v32  ;;  %v286_v35 = vld [vmem:[%s754_s7 + $0x40] sm:$0xff]  ;;  %v288_v38 = vld [vmem:[%s754_s7 + $0x50] sm:$0xff]  ;;  %v289_v39 = vld [vmem:[%s754_s7 + $0x58] sm:$0xff] }
   0xc   :  { %499 = vmatpush3.bf16.msra.mxu0 %v498_v16  ;;  %442 = vmatprep.mubr.msk.f32.mxu0 %vm562_vm0, %v563_v6  ;;  %v522_v37 = vpack.c.bf16 %v287_v36, %v286_v35  ;;  %v525_v40 = vpack.c.bf16 %v289_v39, %v288_v38  ;;  %v290_v41 = vld [vmem:[%s754_s7 + $0x60] sm:$0xff]  ;;  %v291_v42 = vld [vmem:[%s754_s7 + $0x68] sm:$0xff]  ;;  %v292_v44 = vld [vmem:[%s754_s7 + $0x70] sm:$0xff] }
   0xd   :  { %500 = vmatprep.subr.bf16.mxu0 %v561_v3  ;;  %v528_v43 = vpack.c.bf16 %v291_v42, %v290_v41  ;;  %v293_v45 = vld [vmem:[%s754_s7 + $0x78] sm:$0xff]  ;;  %v389_v53 = vld [vmem:[%s753_s6] ss:$0 sm:$0xff]  ;;  %s564_s7 = smov [#allocation2]  }
   0xe   :  { %517 = vmatpush3.bf16.msra.mxu1 %v516_v31  ;;  %v531_v46 = vpack.c.bf16 %v293_v45, %v292_v44  ;;  %v390_v58 = vld [vmem:[%s755_s8] ss:$0 sm:$0xff]  ;;  %s378_s22 = sshll.u32 %s564_s7, 4  ;;  %s379_s22 = int_to_ptr.vmem [resolvable:$true] %s378_s22 }
   0xf   :  { %518 = vmatprep.subr.bf16.mxu1 %v561_v3  ;;  %s537_s5 = scalar_lea.vmem %s379_s22, 128  ;;  %p542_p1 = scmp.lt.s32.totalorder %s379_s22, %s379_s22 }
  0x10   :  { %502 = vmatpush3.bf16.msra.mxu0 %v501_v20  ;;  %p538_p0 = scmp.ne.s32.totalorder %s379_s22, %s537_s5  ;;  %p543_p2 = scmp.lt.s32.totalorder %s537_s5, %s537_s5 }
  0x11   :  { %503 = vmatprep.subr.bf16.mxu0 %v561_v3 }
  0x12   :  { %520 = vmatpush3.bf16.msra.mxu1 %v519_v34  ;;  %p544_p3 = por %p543_p2, %p542_p1 }
  0x13   :  { %443 = vmatmul.mubr.msk.f32.vlgmr.msra.gmra.mrb[2].mxu0 %vm43_vm1, %v33_v23  ;;  %521 = vmatprep.subr.bf16.mxu1 %v561_v3 }
  0x14   :  { %505 = vmatpush3.bf16.msra.mxu0 %v504_v24  ;;  %453 = vmatprep.mubr.msk.f32.mxu0 %vm562_vm0, %v563_v6  ;;  %p545_p4 = pnand %p544_p3, %p538_p0 }
  0x15   :  { %506 = vmatprep.subr.bf16.mxu0 %v561_v3 }
  0x16   :  { %523 = vmatpush3.bf16.msra.mxu1 %v522_v37 }
  0x17   :  { %524 = vmatprep.subr.bf16.mxu1 %v561_v3 }
  0x18   :  { %508 = vmatpush3.bf16.msra.mxu0 %v507_v27 }
  0x1a   :  { %526 = vmatpush3.bf16.msra.mxu1 %v525_v40 }
  0x1b   :  { %454 = vmatmul.mubr.msk.f32.vlgmr.msra.gmra.mrb[4].mxu0 %vm43_vm1, %v190_v28  ;;  %527 = vmatprep.subr.bf16.mxu1 %v561_v3 }
  0x1e   :  { %529 = vmatpush3.bf16.msra.mxu1 %v528_v43 }
  0x1f   :  { %530 = vmatprep.subr.bf16.mxu1 %v561_v3 }
  0x22   :  { %532 = vmatpush3.bf16.msra.mxu1 %v531_v46 }
  0xde   :  { %v113_v47 = vpop.f32.mrb[0].mxu0 }
  0xdf   :  { %v433_v48 = vpop.f32.mrb[1].mxu0 }
  0xe6   :  { %v186_v49 = vpop.f32.mrb[2].mxu0 }
  0xe7   :  { %v187_v50 = vadd.f32 %v186_v49, %v113_v47  ;;  %v444_v51 = vpop.f32.mrb[3].mxu0 }
  0xee   :  { %v264_v52 = vpop.f32.mrb[4].mxu0 }
  0xef   :  { %v268_v54 = vadd.f32 %v264_v52, %v187_v50  ;;  %v455_v55 = vpop.f32.mrb[5].mxu0 }
  0xf1   :  { %v276_v56 = vadd.f32 %v389_v53, %v268_v54 }
  0xf3   :  { %v277_v57 = vmax.f32 %v276_v56, 0.0 }
  0xf5   :  { %489 = vmatmul.mubr.f32.vlgmr.msra.gmra.mrb[0].mxu1 %v277_v57 }
 0x1c8   :  { %v367_v59 = vpop.f32.mrb[0].mxu1 }
 0x1c9   :  { %v368_v60 = vadd.f32 %v390_v58, %v367_v59  ;;  %v490_v61 = vpop.f32.mrb[1].mxu1 }
 0x1cb   :  { %371 = vst [vmem:[#allocation2] sm:$0xff] %v368_v60 }
 0x1cc   :  { %548 = shalt.err (!%p545_p4)
}
 0x1cd   :  { %s549_s24 = scalar_lea.hbm %s756_s9, 128 }
 0x1ce   :  { %p550_p5 = scmp.ne.s32.totalorder %s756_s9, %s549_s24  ;;  %p553_p6 = scmp.lt.u32.totalorder %s549_s24, %s756_s9 }
 0x1d0   :  { %p555_p7 = pnand %p553_p6, %p550_p5 }
 0x1d2   :  { %558 = shalt.err (!%p555_p7)
}
 0x1d3   :  { %381 = dma.vmem_to_hbm [thread:$0]  %s379_s22, 128, %s756_s9, [#allocation3]  }
 0x1d4   :  { %559 = dma.done.wait [#allocation3], 128  }
 0x1d5   :  { %560 = vsyncadd [#allocation3], 4294967168 }
 0x1d6   :  { %385 = vsyncpa [#allocation3], 1 }

</bundles_post_ra>
